<compile_context>
chip_gen: v7x
topology: tpu7x:2x2x1
jax: 0.10.0
libtpu: 0.0.40
codegen_flags: <defaults>
</compile_context>

<pallas_src>
import functools
import math

import jax
import jax.numpy as jnp
from jax.experimental import pallas as pl
from jax.experimental.pallas import tpu as pltpu


def _layer_norm(y, gamma, beta, eps=1e-5):
    # PyTorch LayerNorm: biased variance over the last dim, eps inside rsqrt.
    mu = jnp.mean(y, axis=-1, keepdims=True)
    d = y - mu
    var = jnp.mean(d * d, axis=-1, keepdims=True)
    inv = jax.lax.rsqrt(var + eps)
    return d * inv * gamma + beta


def tokens_self_attn_kernel(
    x_ref,                         # (BT, L, D)
    wqkv_ref, bqkv_ref,            # (D, 3D), (1, 3D)   (scale folded into Q columns)
    wo_ref, bo_ref,                # (D, D), (1, D)
    w1_ref, b1_ref,                # (D, dff), (1, dff)
    w2_ref, b2_ref,                # (dff, D), (1, D)
    g1_ref, be1_ref, g2_ref, be2_ref,   # (1, D) each
    o_ref,                         # (BT, L, D)
    *, nhead,
):
    BT, L, D = x_ref.shape
    hd = D // nhead
    cdt = wqkv_ref.dtype           # matmul-operand dtype (f32 or bf16)

    x = x_ref[...].astype(jnp.float32)          # (BT, L, D)
    xm = x.reshape(BT * L, D)                   # fold batch into the matmul M dim

    # ---- fused QKV projection: single (M, D) @ (D, 3D) matmul on the MXU ----
    qkv = jnp.dot(xm.astype(cdt), wqkv_ref[...],
                  preferred_element_type=jnp.float32) + bqkv_ref[...]       # (M, 3D) f32

    q3 = qkv[:, 0 * D:1 * D].reshape(BT, L, D)   # leading-dim split only (cheap)
    k3 = qkv[:, 1 * D:2 * D].reshape(BT, L, D)
    v3 = qkv[:, 2 * D:3 * D].reshape(BT, L, D)

    # Merge heads into a leading batch axis (head-major): (H*BT, L, hd).
    def split_heads(t3):
        return jnp.concatenate(
            [t3[:, :, h * hd:(h + 1) * hd] for h in range(nhead)], axis=0)

    q = split_heads(q3).astype(cdt)
    k = split_heads(k3).astype(cdt)
    v = split_heads(v3).astype(cdt)

    # ---- batched attention over (head * batch); 1/sqrt(hd) already folded into Q ----
    s = jnp.einsum('bqd,bkd->bqk', q, k,
                   preferred_element_type=jnp.float32)                      # (H*BT, L, L)
    s = s - jnp.max(s, axis=-1, keepdims=True)
    p = jnp.exp(s)
    p = p * pl.reciprocal(jnp.sum(p, axis=-1, keepdims=True), approx=True)  # EUP recip
    o = jnp.einsum('bqk,bkd->bqd', p.astype(cdt), v,
                   preferred_element_type=jnp.float32)                      # (H*BT, L, hd)

    # ---- concat heads along lanes -> (M, D); single fused out-projection matmul ----
    oc = jnp.concatenate(
        [o[h * BT:(h + 1) * BT] for h in range(nhead)], axis=-1)            # (BT, L, D)
    oc = oc.reshape(BT * L, D)
    attn = jnp.dot(oc.astype(cdt), wo_ref[...],
                   preferred_element_type=jnp.float32) + bo_ref[...]        # (M, D)

    # ---- residual + norm1 (dropout12 is identity in eval) ----
    y1 = _layer_norm(xm + attn, g1_ref[...], be1_ref[...])

    # ---- feed-forward: linear2(relu(linear1(y1))), fused full-width matmuls ----
    h1 = jnp.maximum(
        jnp.dot(y1.astype(cdt), w1_ref[...],
                preferred_element_type=jnp.float32) + b1_ref[...], 0.0)     # (M, dff)
    ffn = jnp.dot(h1.astype(cdt), w2_ref[...],
                  preferred_element_type=jnp.float32) + b2_ref[...]         # (M, D)

    # ---- residual + norm2 (dropout2 is identity in eval) ----
    y2 = _layer_norm(y1 + ffn, g2_ref[...], be2_ref[...])

    o_ref[...] = y2.reshape(BT, L, D).astype(o_ref.dtype)


def _pick_batch_tile(B, L, target_rows=256):
    """Largest divisor of B such that the folded matmul M dim (bt * L) <= target_rows."""
    bt = 1
    for cand in range(1, B + 1):
        if B % cand == 0 and cand * L <= target_rows:
            bt = cand
    return bt


def tokens_self_attn(x, params, nhead, *, matmul_dtype=jnp.float32, batch_tile=None):
    """x: (B, L, D) float32.  Returns (B, L, D)."""
    B, L, D = x.shape
    hd = D // nhead
    dff = params["w1"].shape[0]
    scale = 1.0 / math.sqrt(hd)

    # --- glue: reshape PyTorch-convention weights into kernel-friendly fused layouts ---
    in_w = params["in_proj_weight"].astype(jnp.float32)     # (3D, D) = [Wq; Wk; Wv]
    in_b = params["in_proj_bias"].astype(jnp.float32)       # (3D,)
    # Fold the 1/sqrt(hd) attention scale into the Q projection.
    wqkv = jnp.concatenate([in_w[:D] * scale, in_w[D:]], axis=0)        # (3D, D)
    bqkv = jnp.concatenate([in_b[:D] * scale, in_b[D:]], axis=0)        # (3D,)
    wqkv_t = wqkv.T.astype(matmul_dtype)                                # (D, 3D)
    bqkv_r = bqkv.reshape(1, 3 * D)

    wo_t = params["out_proj_weight"].T.astype(matmul_dtype)             # (D, D)
    bo = params["out_proj_bias"].reshape(1, D)

    w1_t = params["w1"].T.astype(matmul_dtype)                          # (D, dff)
    b1 = params["b1"].reshape(1, dff)
    w2_t = params["w2"].T.astype(matmul_dtype)                          # (dff, D)
    b2 = params["b2"].reshape(1, D)

    g1 = params["ln1_w"].reshape(1, D)
    be1 = params["ln1_b"].reshape(1, D)
    g2 = params["ln2_w"].reshape(1, D)
    be2 = params["ln2_b"].reshape(1, D)

    bt = batch_tile if batch_tile is not None else _pick_batch_tile(B, L)
    grid = (B // bt,)

    operands = (x, wqkv_t, bqkv_r, wo_t, bo, w1_t, b1, w2_t, b2, g1, be1, g2, be2)

    full = lambda a: pl.BlockSpec(a.shape, lambda i: (0,) * a.ndim)
    in_specs = [pl.BlockSpec((bt, L, D), lambda i: (i, 0, 0))] + [full(a) for a in operands[1:]]

    kernel = functools.partial(tokens_self_attn_kernel, nhead=nhead)

    return pl.pallas_call(
        kernel,
        out_shape=jax.ShapeDtypeStruct((B, L, D), x.dtype),
        grid=grid,
        in_specs=in_specs,
        out_specs=pl.BlockSpec((bt, L, D), lambda i: (i, 0, 0)),
        compiler_params=pltpu.CompilerParams(
            dimension_semantics=("parallel",),
            vmem_limit_bytes=48 * 1024 * 1024,   # above v5e's 16 MiB default scoped limit
        ),
    )(*operands)


def tokens_self_attn_ref(x, params, nhead):
    """Pure-JAX reference (mirrors PyTorch eval-mode forward)."""
    B, L, D = x.shape
    hd = D // nhead
    in_w, in_b = params["in_proj_weight"], params["in_proj_bias"]
    q = x @ in_w[:D].T + in_b[:D]
    k = x @ in_w[D:2 * D].T + in_b[D:2 * D]
    v = x @ in_w[2 * D:].T + in_b[2 * D:]
    q = q.reshape(B, L, nhead, hd).transpose(0, 2, 1, 3)
    k = k.reshape(B, L, nhead, hd).transpose(0, 2, 1, 3)
    v = v.reshape(B, L, nhead, hd).transpose(0, 2, 1, 3)
    s = jnp.einsum("bhqd,bhkd->bhqk", q, k) / math.sqrt(hd)
    p = jax.nn.softmax(s, axis=-1)
    o = jnp.einsum("bhqk,bhkd->bhqd", p, v).transpose(0, 2, 1, 3).reshape(B, L, D)
    attn = o @ params["out_proj_weight"].T + params["out_proj_bias"]

    def ln(y, g, b):
        mu = jnp.mean(y, -1, keepdims=True)
        var = jnp.mean((y - mu) ** 2, -1, keepdims=True)
        return (y - mu) * jax.lax.rsqrt(var + 1e-5) * g + b

    y1 = ln(x + attn, params["ln1_w"], params["ln1_b"])
    ffn = jnp.maximum(y1 @ params["w1"].T + params["b1"], 0.0) @ params["w2"].T + params["b2"]
    return ln(y1 + ffn, params["ln2_w"], params["ln2_b"])


def make_params(key, d_model, nhead, dff):
    ks = jax.random.split(key, 8)
    s = 0.1
    return {
        "in_proj_weight": s * jax.random.normal(ks[0], (3 * d_model, d_model), jnp.float32),
        "in_proj_bias":   s * jax.random.normal(ks[1], (3 * d_model,), jnp.float32),
        "out_proj_weight": s * jax.random.normal(ks[2], (d_model, d_model), jnp.float32),
        "out_proj_bias":   s * jax.random.normal(ks[3], (d_model,), jnp.float32),
        "w1": s * jax.random.normal(ks[4], (dff, d_model), jnp.float32),
        "b1": s * jax.random.normal(ks[5], (dff,), jnp.float32),
        "w2": s * jax.random.normal(ks[6], (d_model, dff), jnp.float32),
        "b2": s * jax.random.normal(ks[7], (d_model,), jnp.float32),
        "ln1_w": jnp.ones((d_model,), jnp.float32),
        "ln1_b": jnp.zeros((d_model,), jnp.float32),
        "ln2_w": jnp.ones((d_model,), jnp.float32),
        "ln2_b": jnp.zeros((d_model,), jnp.float32),
    }


if __name__ == "__main__":
    B, L, D, H, DFF = 2, 8, 32, 4, 64
    key = jax.random.PRNGKey(0)
    kx, kp = jax.random.split(key)
    x = jax.random.normal(kx, (B, L, D), jnp.float32)
    params = make_params(kp, D, H, DFF)

    out = tokens_self_attn(x, params, H)          # f32 matmuls; bf16 available via matmul_dtype
    out = jax.block_until_ready(out)

    ref = tokens_self_attn_ref(x, params, H)
    assert out.shape == (B, L, D)
    max_err = float(jnp.max(jnp.abs(out - ref)))
    # Tolerance accounts for the EUP approximate reciprocal in the softmax denominator.
    assert jnp.allclose(out, ref, atol=2e-3, rtol=2e-3), max_err

    print("KERNEL_OK")
</pallas_src>

<mosaic_0001>
module attributes {stable_mosaic.version = 11 : i64} {
  func.func @tokens_self_attn_kernel(%arg0: i32, %arg1: memref<2x8x32xf32, #tpu.memory_space<vmem>>, %arg2: memref<32x96xf32, #tpu.memory_space<vmem>>, %arg3: memref<1x96xf32, #tpu.memory_space<vmem>>, %arg4: memref<32x32xf32, #tpu.memory_space<vmem>>, %arg5: memref<1x32xf32, #tpu.memory_space<vmem>>, %arg6: memref<32x64xf32, #tpu.memory_space<vmem>>, %arg7: memref<1x64xf32, #tpu.memory_space<vmem>>, %arg8: memref<64x32xf32, #tpu.memory_space<vmem>>, %arg9: memref<1x32xf32, #tpu.memory_space<vmem>>, %arg10: memref<1x32xf32, #tpu.memory_space<vmem>>, %arg11: memref<1x32xf32, #tpu.memory_space<vmem>>, %arg12: memref<1x32xf32, #tpu.memory_space<vmem>>, %arg13: memref<1x32xf32, #tpu.memory_space<vmem>>, %arg14: memref<2x8x32xf32, #tpu.memory_space<vmem>>) attributes {dimension_semantics = [#tpu.dimension_semantics<parallel>], iteration_bounds = array<i64: 1>, scalar_prefetch = 0 : i64, scratch_operands = 0 : i64, tpu.core_type = #tpu.core_type<tc>, window_params = [{transform_indices = @transform_0, window_bounds = array<i64: 2, 8, 32>}, {pipeline_mode = #tpu.pipeline_mode<synchronous>, transform_indices = @transform_1, window_bounds = array<i64: 32, 96>}, {pipeline_mode = #tpu.pipeline_mode<synchronous>, transform_indices = @transform_2, window_bounds = array<i64: 1, 96>}, {pipeline_mode = #tpu.pipeline_mode<synchronous>, transform_indices = @transform_3, window_bounds = array<i64: 32, 32>}, {pipeline_mode = #tpu.pipeline_mode<synchronous>, transform_indices = @transform_4, window_bounds = array<i64: 1, 32>}, {pipeline_mode = #tpu.pipeline_mode<synchronous>, transform_indices = @transform_5, window_bounds = array<i64: 32, 64>}, {pipeline_mode = #tpu.pipeline_mode<synchronous>, transform_indices = @transform_6, window_bounds = array<i64: 1, 64>}, {pipeline_mode = #tpu.pipeline_mode<synchronous>, transform_indices = @transform_7, window_bounds = array<i64: 64, 32>}, {pipeline_mode = #tpu.pipeline_mode<synchronous>, transform_indices = @transform_8, window_bounds = array<i64: 1, 32>}, {pipeline_mode = #tpu.pipeline_mode<synchronous>, transform_indices = @transform_9, window_bounds = array<i64: 1, 32>}, {pipeline_mode = #tpu.pipeline_mode<synchronous>, transform_indices = @transform_10, window_bounds = array<i64: 1, 32>}, {pipeline_mode = #tpu.pipeline_mode<synchronous>, transform_indices = @transform_11, window_bounds = array<i64: 1, 32>}, {pipeline_mode = #tpu.pipeline_mode<synchronous>, transform_indices = @transform_12, window_bounds = array<i64: 1, 32>}, {transform_indices = @transform_13, window_bounds = array<i64: 2, 8, 32>}]} {
    %c0 = arith.constant 0 : index
    %c0_0 = arith.constant 0 : index
    %c0_1 = arith.constant 0 : index
    %0 = vector.load %arg1[%c0, %c0_0, %c0_1] : memref<2x8x32xf32, #tpu.memory_space<vmem>>, vector<2x8x32xf32>
    %1 = vector.shape_cast %0 : vector<2x8x32xf32> to vector<16x32xf32>
    %c0_2 = arith.constant 0 : index
    %c0_3 = arith.constant 0 : index
    %2 = vector.load %arg2[%c0_2, %c0_3] : memref<32x96xf32, #tpu.memory_space<vmem>>, vector<32x96xf32>
    %cst = arith.constant dense<0.000000e+00> : vector<16x96xf32>
    %3 = tpu.matmul %1, %2, %cst {dimension_numbers = #tpu.dot_dimension_numbers<[1], [0], [0], [1], [0, 0, 1, 1], [], []>} : vector<16x32xf32>, vector<32x96xf32>, vector<16x96xf32> -> vector<16x96xf32>
    %c0_4 = arith.constant 0 : index
    %c0_5 = arith.constant 0 : index
    %4 = vector.load %arg3[%c0_4, %c0_5] : memref<1x96xf32, #tpu.memory_space<vmem>>, vector<1x96xf32>
    %5 = vector.broadcast %4 : vector<1x96xf32> to vector<16x96xf32>
    %6 = arith.addf %3, %5 : vector<16x96xf32>
    %7 = vector.extract_strided_slice %6 {offsets = [0, 0], sizes = [16, 32], strides = [1, 1]} : vector<16x96xf32> to vector<16x32xf32>
    %8 = vector.shape_cast %7 : vector<16x32xf32> to vector<2x8x32xf32>
    %9 = vector.extract_strided_slice %6 {offsets = [0, 32], sizes = [16, 32], strides = [1, 1]} : vector<16x96xf32> to vector<16x32xf32>
    %10 = vector.shape_cast %9 : vector<16x32xf32> to vector<2x8x32xf32>
    %11 = vector.extract_strided_slice %6 {offsets = [0, 64], sizes = [16, 32], strides = [1, 1]} : vector<16x96xf32> to vector<16x32xf32>
    %12 = vector.shape_cast %11 : vector<16x32xf32> to vector<2x8x32xf32>
    %13 = vector.extract_strided_slice %8 {offsets = [0, 0, 0], sizes = [2, 8, 8], strides = [1, 1, 1]} : vector<2x8x32xf32> to vector<2x8x8xf32>
    %14 = vector.extract_strided_slice %8 {offsets = [0, 0, 8], sizes = [2, 8, 8], strides = [1, 1, 1]} : vector<2x8x32xf32> to vector<2x8x8xf32>
    %15 = vector.extract_strided_slice %8 {offsets = [0, 0, 16], sizes = [2, 8, 8], strides = [1, 1, 1]} : vector<2x8x32xf32> to vector<2x8x8xf32>
    %16 = vector.extract_strided_slice %8 {offsets = [0, 0, 24], sizes = [2, 8, 8], strides = [1, 1, 1]} : vector<2x8x32xf32> to vector<2x8x8xf32>
    %17 = tpu.concatenate %13, %14, %15, %16 in 0 : vector<2x8x8xf32>, vector<2x8x8xf32>, vector<2x8x8xf32>, vector<2x8x8xf32> -> vector<8x8x8xf32>
    %18 = vector.extract_strided_slice %10 {offsets = [0, 0, 0], sizes = [2, 8, 8], strides = [1, 1, 1]} : vector<2x8x32xf32> to vector<2x8x8xf32>
    %19 = vector.extract_strided_slice %10 {offsets = [0, 0, 8], sizes = [2, 8, 8], strides = [1, 1, 1]} : vector<2x8x32xf32> to vector<2x8x8xf32>
    %20 = vector.extract_strided_slice %10 {offsets = [0, 0, 16], sizes = [2, 8, 8], strides = [1, 1, 1]} : vector<2x8x32xf32> to vector<2x8x8xf32>
    %21 = vector.extract_strided_slice %10 {offsets = [0, 0, 24], sizes = [2, 8, 8], strides = [1, 1, 1]} : vector<2x8x32xf32> to vector<2x8x8xf32>
    %22 = tpu.concatenate %18, %19, %20, %21 in 0 : vector<2x8x8xf32>, vector<2x8x8xf32>, vector<2x8x8xf32>, vector<2x8x8xf32> -> vector<8x8x8xf32>
    %23 = vector.extract_strided_slice %12 {offsets = [0, 0, 0], sizes = [2, 8, 8], strides = [1, 1, 1]} : vector<2x8x32xf32> to vector<2x8x8xf32>
    %24 = vector.extract_strided_slice %12 {offsets = [0, 0, 8], sizes = [2, 8, 8], strides = [1, 1, 1]} : vector<2x8x32xf32> to vector<2x8x8xf32>
    %25 = vector.extract_strided_slice %12 {offsets = [0, 0, 16], sizes = [2, 8, 8], strides = [1, 1, 1]} : vector<2x8x32xf32> to vector<2x8x8xf32>
    %26 = vector.extract_strided_slice %12 {offsets = [0, 0, 24], sizes = [2, 8, 8], strides = [1, 1, 1]} : vector<2x8x32xf32> to vector<2x8x8xf32>
    %27 = tpu.concatenate %23, %24, %25, %26 in 0 : vector<2x8x8xf32>, vector<2x8x8xf32>, vector<2x8x8xf32>, vector<2x8x8xf32> -> vector<8x8x8xf32>
    "tpu.trace_start"() <{level = 10 : i32, message = "bqd,bkd->bqk"}> : () -> ()
    %cst_6 = arith.constant dense<0.000000e+00> : vector<8x8x8xf32>
    %28 = tpu.matmul %17, %22, %cst_6 {dimension_numbers = #tpu.dot_dimension_numbers<[2], [2], [1], [1], [0, 0, 0, 1, 1, 1], [0], [0]>} : vector<8x8x8xf32>, vector<8x8x8xf32>, vector<8x8x8xf32> -> vector<8x8x8xf32>
    "tpu.trace_stop"() : () -> ()
    %cst_7 = arith.constant dense<0xFF800000> : vector<8x8xf32>
    %29 = vector.multi_reduction <maximumf>, %28, %cst_7 [2] : vector<8x8x8xf32> to vector<8x8xf32>
    %30 = vector.shape_cast %29 : vector<8x8xf32> to vector<8x8x1xf32>
    %31 = vector.broadcast %30 : vector<8x8x1xf32> to vector<8x8x8xf32>
    %32 = arith.subf %28, %31 : vector<8x8x8xf32>
    %33 = math.exp %32 : vector<8x8x8xf32>
    %cst_8 = arith.constant dense<0.000000e+00> : vector<8x8xf32>
    %34 = vector.multi_reduction <add>, %33, %cst_8 [2] : vector<8x8x8xf32> to vector<8x8xf32>
    %35 = vector.shape_cast %34 : vector<8x8xf32> to vector<8x8x1xf32>
    %36 = tpu.reciprocal %35 {approx = true} : vector<8x8x1xf32> -> vector<8x8x1xf32>
    %37 = vector.broadcast %36 : vector<8x8x1xf32> to vector<8x8x8xf32>
    %38 = arith.mulf %33, %37 : vector<8x8x8xf32>
    "tpu.trace_start"() <{level = 10 : i32, message = "bqk,bkd->bqd"}> : () -> ()
    %cst_9 = arith.constant dense<0.000000e+00> : vector<8x8x8xf32>
    %39 = tpu.matmul %38, %27, %cst_9 {dimension_numbers = #tpu.dot_dimension_numbers<[2], [1], [1], [2], [0, 0, 0, 1, 1, 2], [0], [0]>} : vector<8x8x8xf32>, vector<8x8x8xf32>, vector<8x8x8xf32> -> vector<8x8x8xf32>
    "tpu.trace_stop"() : () -> ()
    %40 = vector.extract_strided_slice %39 {offsets = [0, 0, 0], sizes = [2, 8, 8], strides = [1, 1, 1]} : vector<8x8x8xf32> to vector<2x8x8xf32>
    %41 = vector.extract_strided_slice %39 {offsets = [2, 0, 0], sizes = [2, 8, 8], strides = [1, 1, 1]} : vector<8x8x8xf32> to vector<2x8x8xf32>
    %42 = vector.extract_strided_slice %39 {offsets = [4, 0, 0], sizes = [2, 8, 8], strides = [1, 1, 1]} : vector<8x8x8xf32> to vector<2x8x8xf32>
    %43 = vector.extract_strided_slice %39 {offsets = [6, 0, 0], sizes = [2, 8, 8], strides = [1, 1, 1]} : vector<8x8x8xf32> to vector<2x8x8xf32>
    %44 = tpu.concatenate %40, %41, %42, %43 in 2 : vector<2x8x8xf32>, vector<2x8x8xf32>, vector<2x8x8xf32>, vector<2x8x8xf32> -> vector<2x8x32xf32>
    %45 = vector.shape_cast %44 : vector<2x8x32xf32> to vector<16x32xf32>
    %c0_10 = arith.constant 0 : index
    %c0_11 = arith.constant 0 : index
    %46 = vector.load %arg4[%c0_10, %c0_11] : memref<32x32xf32, #tpu.memory_space<vmem>>, vector<32x32xf32>
    %cst_12 = arith.constant dense<0.000000e+00> : vector<16x32xf32>
    %47 = tpu.matmul %45, %46, %cst_12 {dimension_numbers = #tpu.dot_dimension_numbers<[1], [0], [0], [1], [0, 0, 1, 1], [], []>} : vector<16x32xf32>, vector<32x32xf32>, vector<16x32xf32> -> vector<16x32xf32>
    %c0_13 = arith.constant 0 : index
    %c0_14 = arith.constant 0 : index
    %48 = vector.load %arg5[%c0_13, %c0_14] : memref<1x32xf32, #tpu.memory_space<vmem>>, vector<1x32xf32>
    %49 = vector.broadcast %48 : vector<1x32xf32> to vector<16x32xf32>
    %50 = arith.addf %47, %49 : vector<16x32xf32>
    %51 = arith.addf %1, %50 : vector<16x32xf32>
    %c0_15 = arith.constant 0 : index
    %c0_16 = arith.constant 0 : index
    %52 = vector.load %arg10[%c0_15, %c0_16] : memref<1x32xf32, #tpu.memory_space<vmem>>, vector<1x32xf32>
    %c0_17 = arith.constant 0 : index
    %c0_18 = arith.constant 0 : index
    %53 = vector.load %arg11[%c0_17, %c0_18] : memref<1x32xf32, #tpu.memory_space<vmem>>, vector<1x32xf32>
    %cst_19 = arith.constant dense<0.000000e+00> : vector<16xf32>
    %54 = vector.multi_reduction <add>, %51, %cst_19 [1] : vector<16x32xf32> to vector<16xf32>
    %55 = vector.shape_cast %54 : vector<16xf32> to vector<16x1xf32>
    %cst_20 = arith.constant 3.200000e+01 : f32
    %56 = vector.broadcast %cst_20 : f32 to vector<16x1xf32>
    %57 = arith.divf %55, %56 : vector<16x1xf32>
    %58 = vector.broadcast %57 : vector<16x1xf32> to vector<16x32xf32>
    %59 = arith.subf %51, %58 : vector<16x32xf32>
    %60 = arith.mulf %59, %59 : vector<16x32xf32>
    %cst_21 = arith.constant dense<0.000000e+00> : vector<16xf32>
    %61 = vector.multi_reduction <add>, %60, %cst_21 [1] : vector<16x32xf32> to vector<16xf32>
    %62 = vector.shape_cast %61 : vector<16xf32> to vector<16x1xf32>
    %cst_22 = arith.constant 3.200000e+01 : f32
    %63 = vector.broadcast %cst_22 : f32 to vector<16x1xf32>
    %64 = arith.divf %62, %63 : vector<16x1xf32>
    %cst_23 = arith.constant 9.99999974E-6 : f32
    %65 = vector.broadcast %cst_23 : f32 to vector<16x1xf32>
    %66 = arith.addf %64, %65 : vector<16x1xf32>
    %67 = math.rsqrt %66 : vector<16x1xf32>
    %68 = vector.broadcast %67 : vector<16x1xf32> to vector<16x32xf32>
    %69 = arith.mulf %59, %68 : vector<16x32xf32>
    %70 = vector.broadcast %52 : vector<1x32xf32> to vector<16x32xf32>
    %71 = arith.mulf %69, %70 : vector<16x32xf32>
    %72 = vector.broadcast %53 : vector<1x32xf32> to vector<16x32xf32>
    %73 = arith.addf %71, %72 : vector<16x32xf32>
    %c0_24 = arith.constant 0 : index
    %c0_25 = arith.constant 0 : index
    %74 = vector.load %arg6[%c0_24, %c0_25] : memref<32x64xf32, #tpu.memory_space<vmem>>, vector<32x64xf32>
    %cst_26 = arith.constant dense<0.000000e+00> : vector<16x64xf32>
    %75 = tpu.matmul %73, %74, %cst_26 {dimension_numbers = #tpu.dot_dimension_numbers<[1], [0], [0], [1], [0, 0, 1, 1], [], []>} : vector<16x32xf32>, vector<32x64xf32>, vector<16x64xf32> -> vector<16x64xf32>
    %c0_27 = arith.constant 0 : index
    %c0_28 = arith.constant 0 : index
    %76 = vector.load %arg7[%c0_27, %c0_28] : memref<1x64xf32, #tpu.memory_space<vmem>>, vector<1x64xf32>
    %77 = vector.broadcast %76 : vector<1x64xf32> to vector<16x64xf32>
    %78 = arith.addf %75, %77 : vector<16x64xf32>
    %cst_29 = arith.constant 0.000000e+00 : f32
    %79 = vector.broadcast %cst_29 : f32 to vector<16x64xf32>
    %80 = arith.maximumf %78, %79 : vector<16x64xf32>
    %c0_30 = arith.constant 0 : index
    %c0_31 = arith.constant 0 : index
    %81 = vector.load %arg8[%c0_30, %c0_31] : memref<64x32xf32, #tpu.memory_space<vmem>>, vector<64x32xf32>
    %cst_32 = arith.constant dense<0.000000e+00> : vector<16x32xf32>
    %82 = tpu.matmul %80, %81, %cst_32 {dimension_numbers = #tpu.dot_dimension_numbers<[1], [0], [0], [1], [0, 0, 1, 1], [], []>} : vector<16x64xf32>, vector<64x32xf32>, vector<16x32xf32> -> vector<16x32xf32>
    %c0_33 = arith.constant 0 : index
    %c0_34 = arith.constant 0 : index
    %83 = vector.load %arg9[%c0_33, %c0_34] : memref<1x32xf32, #tpu.memory_space<vmem>>, vector<1x32xf32>
    %84 = vector.broadcast %83 : vector<1x32xf32> to vector<16x32xf32>
    %85 = arith.addf %82, %84 : vector<16x32xf32>
    %86 = arith.addf %73, %85 : vector<16x32xf32>
    %c0_35 = arith.constant 0 : index
    %c0_36 = arith.constant 0 : index
    %87 = vector.load %arg12[%c0_35, %c0_36] : memref<1x32xf32, #tpu.memory_space<vmem>>, vector<1x32xf32>
    %c0_37 = arith.constant 0 : index
    %c0_38 = arith.constant 0 : index
    %88 = vector.load %arg13[%c0_37, %c0_38] : memref<1x32xf32, #tpu.memory_space<vmem>>, vector<1x32xf32>
    %cst_39 = arith.constant dense<0.000000e+00> : vector<16xf32>
    %89 = vector.multi_reduction <add>, %86, %cst_39 [1] : vector<16x32xf32> to vector<16xf32>
    %90 = vector.shape_cast %89 : vector<16xf32> to vector<16x1xf32>
    %cst_40 = arith.constant 3.200000e+01 : f32
    %91 = vector.broadcast %cst_40 : f32 to vector<16x1xf32>
    %92 = arith.divf %90, %91 : vector<16x1xf32>
    %93 = vector.broadcast %92 : vector<16x1xf32> to vector<16x32xf32>
    %94 = arith.subf %86, %93 : vector<16x32xf32>
    %95 = arith.mulf %94, %94 : vector<16x32xf32>
    %cst_41 = arith.constant dense<0.000000e+00> : vector<16xf32>
    %96 = vector.multi_reduction <add>, %95, %cst_41 [1] : vector<16x32xf32> to vector<16xf32>
    %97 = vector.shape_cast %96 : vector<16xf32> to vector<16x1xf32>
    %cst_42 = arith.constant 3.200000e+01 : f32
    %98 = vector.broadcast %cst_42 : f32 to vector<16x1xf32>
    %99 = arith.divf %97, %98 : vector<16x1xf32>
    %cst_43 = arith.constant 9.99999974E-6 : f32
    %100 = vector.broadcast %cst_43 : f32 to vector<16x1xf32>
    %101 = arith.addf %99, %100 : vector<16x1xf32>
    %102 = math.rsqrt %101 : vector<16x1xf32>
    %103 = vector.broadcast %102 : vector<16x1xf32> to vector<16x32xf32>
    %104 = arith.mulf %94, %103 : vector<16x32xf32>
    %105 = vector.broadcast %87 : vector<1x32xf32> to vector<16x32xf32>
    %106 = arith.mulf %104, %105 : vector<16x32xf32>
    %107 = vector.broadcast %88 : vector<1x32xf32> to vector<16x32xf32>
    %108 = arith.addf %106, %107 : vector<16x32xf32>
    %109 = vector.shape_cast %108 : vector<16x32xf32> to vector<2x8x32xf32>
    %c0_44 = arith.constant 0 : index
    %c0_45 = arith.constant 0 : index
    %c0_46 = arith.constant 0 : index
    %110 = vector.load %arg14[%c0_44, %c0_45, %c0_46] : memref<2x8x32xf32, #tpu.memory_space<vmem>>, vector<2x8x32xf32>
    tpu.vector_store %arg14[%c0_44, %c0_45, %c0_46], %109 {strides = array<i32>} : memref<2x8x32xf32, #tpu.memory_space<vmem>>, vector<2x8x32xf32>,
    return
  }
  func.func @transform_0(%arg0: i32) -> (i32, i32, i32) {
    %c0_i32 = arith.constant 0 : i32
    %c0_i32_0 = arith.constant 0 : i32
    %c0_i32_1 = arith.constant 0 : i32
    return %arg0, %c0_i32, %c0_i32_0 : i32, i32, i32
  }
  func.func @transform_1(%arg0: i32) -> (i32, i32) {
    %c0_i32 = arith.constant 0 : i32
    %c0_i32_0 = arith.constant 0 : i32
    %c0_i32_1 = arith.constant 0 : i32
    return %c0_i32, %c0_i32_0 : i32, i32
  }
  func.func @transform_2(%arg0: i32) -> (i32, i32) {
    %c0_i32 = arith.constant 0 : i32
    %c0_i32_0 = arith.constant 0 : i32
    %c0_i32_1 = arith.constant 0 : i32
    return %c0_i32, %c0_i32_0 : i32, i32
  }
  func.func @transform_3(%arg0: i32) -> (i32, i32) {
    %c0_i32 = arith.constant 0 : i32
    %c0_i32_0 = arith.constant 0 : i32
    %c0_i32_1 = arith.constant 0 : i32
    return %c0_i32, %c0_i32_0 : i32, i32
  }
  func.func @transform_4(%arg0: i32) -> (i32, i32) {
    %c0_i32 = arith.constant 0 : i32
    %c0_i32_0 = arith.constant 0 : i32
    %c0_i32_1 = arith.constant 0 : i32
    return %c0_i32, %c0_i32_0 : i32, i32
  }
  func.func @transform_5(%arg0: i32) -> (i32, i32) {
    %c0_i32 = arith.constant 0 : i32
    %c0_i32_0 = arith.constant 0 : i32
    %c0_i32_1 = arith.constant 0 : i32
    return %c0_i32, %c0_i32_0 : i32, i32
  }
  func.func @transform_6(%arg0: i32) -> (i32, i32) {
    %c0_i32 = arith.constant 0 : i32
    %c0_i32_0 = arith.constant 0 : i32
    %c0_i32_1 = arith.constant 0 : i32
    return %c0_i32, %c0_i32_0 : i32, i32
  }
  func.func @transform_7(%arg0: i32) -> (i32, i32) {
    %c0_i32 = arith.constant 0 : i32
    %c0_i32_0 = arith.constant 0 : i32
    %c0_i32_1 = arith.constant 0 : i32
    return %c0_i32, %c0_i32_0 : i32, i32
  }
  func.func @transform_8(%arg0: i32) -> (i32, i32) {
    %c0_i32 = arith.constant 0 : i32
    %c0_i32_0 = arith.constant 0 : i32
    %c0_i32_1 = arith.constant 0 : i32
    return %c0_i32, %c0_i32_0 : i32, i32
  }
  func.func @transform_9(%arg0: i32) -> (i32, i32) {
    %c0_i32 = arith.constant 0 : i32
    %c0_i32_0 = arith.constant 0 : i32
    %c0_i32_1 = arith.constant 0 : i32
    return %c0_i32, %c0_i32_0 : i32, i32
  }
  func.func @transform_10(%arg0: i32) -> (i32, i32) {
    %c0_i32 = arith.constant 0 : i32
    %c0_i32_0 = arith.constant 0 : i32
    %c0_i32_1 = arith.constant 0 : i32
    return %c0_i32, %c0_i32_0 : i32, i32
  }
  func.func @transform_11(%arg0: i32) -> (i32, i32) {
    %c0_i32 = arith.constant 0 : i32
    %c0_i32_0 = arith.constant 0 : i32
    %c0_i32_1 = arith.constant 0 : i32
    return %c0_i32, %c0_i32_0 : i32, i32
  }
  func.func @transform_12(%arg0: i32) -> (i32, i32) {
    %c0_i32 = arith.constant 0 : i32
    %c0_i32_0 = arith.constant 0 : i32
    %c0_i32_1 = arith.constant 0 : i32
    return %c0_i32, %c0_i32_0 : i32, i32
  }
  func.func @transform_13(%arg0: i32) -> (i32, i32, i32) {
    %c0_i32 = arith.constant 0 : i32
    %c0_i32_0 = arith.constant 0 : i32
    %c0_i32_1 = arith.constant 0 : i32
    return %arg0, %c0_i32, %c0_i32_0 : i32, i32, i32
  }
}

</mosaic_0001>

<bundles_post_ra>
// kernel: tpu_custom_call.1
= control target key start
LH: loop header
LB: loop body
LE: loop exit
PB: predicated region body
PF: predicated region fallthrough
CT: control target
= control target key end

     0   :  { %18 = vsyncpa [#allocation3], 0  ;;  %s2652_s0 = inlined_call_operand.hbm [shape: f32[2,8,32], index: 0, kind: input, shape index: {}]   ;;  %s2653_s1 = inlined_call_operand.vmem [shape: f32[32,96], index: 1, kind: input, shape index: {}]   ;;  %s2654_s2 = inlined_call_operand.vmem [shape: f32[1,96], index: 2, kind: input, shape index: {}]   ;;  %s2655_s3 = inlined_call_operand.vmem [shape: f32[32,32], index: 3, kind: input, shape index: {}]   ;;  %s2656_s4 = inlined_call_operand.vmem [shape: f32[1,32], index: 4, kind: input, shape index: {}]   ;;  %s2657_s5 = inlined_call_operand.vmem [shape: f32[32,64], index: 5, kind: input, shape index: {}]   ;;  %s2658_s6 = inlined_call_operand.vmem [shape: f32[1,64], index: 6, kind: input, shape index: {}]   ;;  %s2659_s7 = inlined_call_operand.vmem [shape: f32[64,32], index: 7, kind: input, shape index: {}]   ;;  %s2660_s8 = inlined_call_operand.vmem [shape: f32[1,32], index: 8, kind: input, shape index: {}]   ;;  %s2661_s9 = inlined_call_operand.vmem [shape: f32[1,32], index: 9, kind: input, shape index: {}]   ;;  %s2662_s10 = inlined_call_operand.vmem [shape: f32[1,32], index: 10, kind: input, shape index: {}]   ;;  %s2663_s11 = inlined_call_operand.vmem [shape: f32[1,32], index: 11, kind: input, shape index: {}]   ;;  %s2664_s12 = inlined_call_operand.vmem [shape: f32[1,32], index: 12, kind: input, shape index: {}]   ;;  %s2665_s13 = inlined_call_operand.hbm [shape: f32[2,8,32], index: 13, kind: output, shape index: {}]  }
   0x1   :  { %19 = vsyncpa [#allocation4], 0  ;;  %s2273_s25 = smov [#allocation2]   ;;  %s2225_s29 = scalar_lea.hbm %s2652_s0, 256 }
   0x2   :  { %s25_s26 = sshll.u32 %s2273_s25, 4  ;;  %p2226_p0 = scmp.ne.s32.totalorder %s2652_s0, %s2225_s29  ;;  %s26_s26 = int_to_ptr.vmem [resolvable:$true] %s25_s26 }
   0x3   :  { %p2229_p1 = scmp.lt.u32.totalorder %s2225_s29, %s2652_s0 }
   0x5   :  { %p2231_p2 = pnand %p2229_p1, %p2226_p0 }
   0x7   :  { %2234 = shalt.err (!%p2231_p2)
}
   0x8   :  { %s2235_s17 = scalar_lea.vmem %s26_s26, 256  ;;  %p2240_p4 = scmp.lt.s32.totalorder %s26_s26, %s26_s26 }
   0x9   :  { %p2236_p3 = scmp.ne.s32.totalorder %s26_s26, %s2235_s17  ;;  %p2241_p5 = scmp.lt.s32.totalorder %s2235_s17, %s2235_s17 }
   0xb   :  { %p2242_p6 = por %p2241_p5, %p2240_p4 }
   0xd   :  { %p2243_p7 = pnand %p2242_p6, %p2236_p3 }
   0xf   :  { %2246 = shalt.err (!%p2243_p7)
}
  0x10   :  { %s2274_s18 = smov 128   ;;  %s2275_s19 = smov 8  }
  0x11   :  { %31 = dma.hbm_to_vmem [thread:$0]  %s2652_s0, 256, %s26_s26, [#allocation3], %s2274_s18, %s2274_s18, %s2275_s19  }
  0x12   :  { %2269 = dma.done.wait [#allocation3], 256  }
  0x13   :  { %2270 = vsyncadd [#allocation3], 4294967040  ;;  %vm72_vm0 = vcmask 261120   ;;  %v61_v0 = vld [vmem:[%s2653_s1] sm:$0xff]  ;;  %v62_v1 = vld [vmem:[%s2653_s1 + $0x8] sm:$0xff]  ;;  %v2276_v10 = vmov 0.0  }
  0x14   :  { %v63_v2 = vld [vmem:[%s2653_s1 + $0x10] sm:$0xff]  ;;  %v2132_v3 = vpack.c.bf16 %v62_v1, %v61_v0  ;;  %v64_v4 = vld [vmem:[%s2653_s1 + $0x18] sm:$0xff]  ;;  %v2383_v5 = vld [vmem:[#allocation2] sm:$0xff]  ;;  %2021 = vmatprep.subr.mxu0 %v2276_v10  ;;  %s2277_s1 = smov 112   ;;  %s2278_s14 = smov 120   ;;  %vm2279_vm1 = vmmov 0  }
  0x15   :  { %v2136_v6 = vpack.c.bf16 %v64_v4, %v63_v2  ;;  %2008 = vmatprep.mubr.msk.f32.mxu1 %vm72_vm0, %v2383_v5  ;;  %v2387_v7 = vld [vmem:[#allocation2 + $0x8] sm:$0xff]  ;;  %v1900_v8 = vld [vmem:[%s2654_s2] ss:$0 sm:$0xff]  ;;  %2023 = vmatprep.mubr.msk.f32.mxu0 %vm2279_vm1, %v2276_v10  ;;  %s2280_s2 = smov 104   ;;  %s2281_s15 = smov 96   ;;  %vm170_vm2 = vcmask 64512  }
  0x16   :  { %2133 = vmatprep.subr.bf16.mxu1 %v2132_v3  ;;  %s2282_s16 = smov 64   ;;  %s2283_s28 = smov 16   ;;  %vm1499_vm3 = vcmask 130048   ;;  %vm1502_vm4 = vcmask 195584   ;;  %vm1753_vm5 = vcmask 523264  }
  0x17   :  { %2135 = vmatpush3.bf16.msra.mxu1 %v2132_v3  ;;  %s2284_s29 = smov 24   ;;  %s2285_s21 = smov [#allocation5]  }
  0x18   :  { %2137 = vmatprep.subr.bf16.mxu1 %v2136_v6  ;;  %s1888_s22 = sshll.u32 %s2285_s21, 4  ;;  %s1889_s22 = int_to_ptr.vmem [resolvable:$true] %s1888_s22 }
  0x19   :  { %s2247_s23 = scalar_lea.vmem %s1889_s22, 256  ;;  %p2252_p9 = scmp.lt.s32.totalorder %s1889_s22, %s1889_s22 }
  0x1a   :  { %p2248_p8 = scmp.ne.s32.totalorder %s1889_s22, %s2247_s23  ;;  %p2253_p10 = scmp.lt.s32.totalorder %s2247_s23, %s2247_s23 }
  0x1b   :  { %2139 = vmatpush3.bf16.msra.mxu1 %v2136_v6 }
  0x1c   :  { %2011 = vmatprep.subr.mxu1 %v2276_v10  ;;  %p2254_p11 = por %p2253_p10, %p2252_p9 }
  0x1e   :  { %2009 = vmatmul.mubr.msk.f32.vlgmr.msra.gmra.mrb[0].mxu1 %vm72_vm0, %v2387_v7  ;;  %p2255_p12 = pnand %p2254_p11, %p2248_p8 }
  0x1f   :  { %2013 = vmatprep.mubr.msk.f32.mxu1 %vm2279_vm1, %v2276_v10 }
  0xf1   :  { %v2010_v9 = vpop.f32.mrb[0].mxu1 }
  0xf2   :  { %v145_v11 = vpop.f32.mrb[1].mxu1  ;;  %v2404_v13 = vadd.f32 %v2010_v9, %v1900_v8 }
  0xf3   :  { %v2396_v12 = vadd.f32 %v1900_v8, %v145_v11 }
  0xf5   :  { %160 = vrot.lane.b32.xlu1 %v2396_v12, %s2277_s1  ;;  %156 = vrot.lane.b32.xlu0 %v2396_v12, %s2278_s14 }
  0xf9   :  { %162 = vrot.lane.b32.xlu1 %v2404_v13, %s2277_s1  ;;  %158 = vrot.lane.b32.xlu0 %v2404_v13, %s2278_s14 }
  0xfd   :  { %166 = vrot.lane.b32.xlu1 %v2404_v13, %s2280_s2  ;;  %164 = vrot.lane.b32.xlu0 %v2396_v12, %s2280_s2 }
 0x101   :  { %245 = vrot.lane.b32.xlu1 %v2404_v13, %s2281_s15  ;;  %168 = vrot.lane.b32.xlu0 %v2396_v12, %s2281_s15 }
 0x167   :  { %v2412_v14 = vpop.permute.xlu1 %160  ;;  %v2414_v15 = vpop.permute.xlu0 %156 }
 0x168   :  { %321 = vrot.lane.b32.xlu0 %v2414_v15, %s2281_s15 }
 0x16b   :  { %v2417_v16 = vpop.permute.xlu1 %162  ;;  %v2419_v17 = vpop.permute.xlu0 %158 }
 0x16c   :  { %473 = vrot.lane.b32.xlu0 %v2412_v14, %s2281_s15  ;;  %397 = vrot.lane.b32.xlu1 %v2419_v17, %s2281_s15 }
 0x16f   :  { %v2423_v18 = vpop.permute.xlu0 %164  ;;  %v2427_v19 = vpop.permute.xlu1 %166 }
 0x170   :  { %549 = vrot.lane.b32.xlu1 %v2417_v16, %s2281_s15  ;;  %625 = vrot.lane.b32.xlu0 %v2423_v18, %s2281_s15 }
 0x173   :  { %v169_v20 = vpop.permute.xlu0 %168  ;;  %v246_v21 = vpop.permute.xlu1 %245 }
 0x174   :  { %701 = vrot.lane.b32.xlu1 %v2427_v19, %s2281_s15  ;;  %2012 = vmatpush3.xpose.msk.msra.mxu1 %vm170_vm2, %v169_v20 }
 0x175   :  { %2016 = vmatprep.subr.mxu1 %v2276_v10 }
 0x177   :  { %2014 = vmatmul.mubr.msk.f32.vlgmr.msra.gmra.mrb[2].mxu1 %vm170_vm2, %v2396_v12 }
 0x178   :  { %2017 = vmatpush3.xpose.msk.msra.mxu1 %vm170_vm2, %v246_v21  ;;  %2018 = vmatprep.mubr.msk.f32.mxu1 %vm2279_vm1, %v2276_v10 }
 0x179   :  { %2026 = vmatprep.subr.mxu1 %v2276_v10 }
 0x17b   :  { %2019 = vmatmul.mubr.msk.f32.vlgmr.msra.gmra.mrb[4].mxu1 %vm170_vm2, %v2404_v13 }
 0x17c   :  { %2028 = vmatprep.mubr.msk.f32.mxu1 %vm2279_vm1, %v2276_v10 }
 0x1da   :  { %v322_v22 = vpop.permute.xlu0 %321 }
 0x1db   :  { %2022 = vmatpush3.xpose.msk.msra.mxu0 %vm170_vm2, %v322_v22 }
 0x1dc   :  { %2031 = vmatprep.subr.mxu0 %v2276_v10 }
 0x1de   :  { %v398_v23 = vpop.permute.xlu1 %397  ;;  %2024 = vmatmul.mubr.msk.f32.vlgmr.msra.gmra.mrb[0].mxu0 %vm170_vm2, %v2414_v15  ;;  %v474_v24 = vpop.permute.xlu0 %473 }
 0x1df   :  { %2027 = vmatpush3.xpose.msk.msra.mxu1 %vm170_vm2, %v398_v23  ;;  %2032 = vmatpush3.xpose.msk.msra.mxu0 %vm170_vm2, %v474_v24 }
 0x1e0   :  { %2033 = vmatprep.mubr.msk.f32.mxu0 %vm2279_vm1, %v2276_v10  ;;  %2036 = vmatprep.subr.mxu1 %v2276_v10 }
 0x1e1   :  { %2041 = vmatprep.subr.mxu0 %v2276_v10 }
 0x1e2   :  { %v550_v25 = vpop.permute.xlu1 %549  ;;  %2029 = vmatmul.mubr.msk.f32.vlgmr.msra.gmra.mrb[6].mxu1 %vm170_vm2, %v2419_v17  ;;  %2034 = vmatmul.mubr.msk.f32.vlgmr.msra.gmra.mrb[2].mxu0 %vm170_vm2, %v2412_v14  ;;  %v626_v26 = vpop.permute.xlu0 %625 }
 0x1e3   :  { %2037 = vmatpush3.xpose.msk.msra.mxu1 %vm170_vm2, %v550_v25  ;;  %2042 = vmatpush3.xpose.msk.msra.mxu0 %vm170_vm2, %v626_v26 }
 0x1e4   :  { %2038 = vmatprep.mubr.msk.f32.mxu1 %vm2279_vm1, %v2276_v10  ;;  %2043 = vmatprep.mubr.msk.f32.mxu0 %vm2279_vm1, %v2276_v10 }
 0x1e5   :  { %2046 = vmatprep.subr.mxu1 %v2276_v10  ;;  %2051 = vmatprep.subr.mxu0 %v2276_v10 }
 0x1e6   :  { %v702_v27 = vpop.permute.xlu1 %701  ;;  %2039 = vmatmul.mubr.msk.f32.vlgmr.msra.gmra.mrb[8].mxu1 %vm170_vm2, %v2417_v16  ;;  %2044 = vmatmul.mubr.msk.f32.vlgmr.msra.gmra.mrb[4].mxu0 %vm170_vm2, %v2423_v18 }
 0x1e7   :  { %2047 = vmatpush3.xpose.msk.msra.mxu1 %vm170_vm2, %v702_v27  ;;  %2048 = vmatprep.mubr.msk.f32.mxu1 %vm2279_vm1, %v2276_v10 }
 0x1e8   :  { %2056 = vmatprep.subr.mxu1 %v2276_v10  ;;  %2053 = vmatprep.mubr.msk.f32.mxu0 %vm2279_vm1, %v2276_v10 }
 0x1ea   :  { %2049 = vmatmul.mubr.msk.f32.vlgmr.msra.gmra.mrb[10].mxu1 %vm170_vm2, %v2427_v19 }
 0x1eb   :  { %2058 = vmatprep.mubr.msk.f32.mxu1 %vm2279_vm1, %v2276_v10 }
 0x24a   :  { %v241_v28 = vpop.f32.mrb[2].mxu1 }
 0x24b   :  { %v2015_v29 = vpop.f32.mrb[3].mxu1  ;;  %v777_v30 = vsel %vm170_vm2, %v241_v28, -inf }
 0x24c   :  { %778 = vmax.xlane.f32.xlu0 %v777_v30 }
 0x24e   :  { %v317_v31 = vpop.f32.mrb[4].mxu1 }
 0x24f   :  { %v2020_v32 = vpop.f32.mrb[5].mxu1  ;;  %v780_v33 = vsel %vm170_vm2, %v317_v31, -inf }
 0x250   :  { %781 = vmax.xlane.f32.xlu1 %v780_v33 }
 0x2b1   :  { %v393_v34 = vpop.f32.mrb[0].mxu0 }
 0x2b2   :  { %v2025_v35 = vpop.f32.mrb[1].mxu0  ;;  %v783_v36 = vsel %vm170_vm2, %v393_v34, -inf }
 0x2b3   :  { %784 = vmax.xlane.f32.xlu0 %v783_v36 }
 0x2b5   :  { %v469_v37 = vpop.f32.mrb[6].mxu1  ;;  %v545_v38 = vpop.f32.mrb[2].mxu0 }
 0x2b6   :  { %v2030_v39 = vpop.f32.mrb[7].mxu1  ;;  %v2035_v40 = vpop.f32.mrb[3].mxu0  ;;  %v786_v41 = vsel %vm170_vm2, %v469_v37, -inf  ;;  %v789_v42 = vsel %vm170_vm2, %v545_v38, -inf }
 0x2b7   :  { %787 = vmax.xlane.f32.xlu0 %v786_v41  ;;  %790 = vmax.xlane.f32.xlu1 %v789_v42 }
 0x2b9   :  { %v621_v43 = vpop.f32.mrb[8].mxu1  ;;  %v697_v44 = vpop.f32.mrb[4].mxu0 }
 0x2ba   :  { %v2040_v45 = vpop.f32.mrb[9].mxu1  ;;  %v2045_v46 = vpop.f32.mrb[5].mxu0  ;;  %v792_v47 = vsel %vm170_vm2, %v621_v43, -inf  ;;  %v795_v48 = vsel %vm170_vm2, %v697_v44, -inf }
 0x2bb   :  { %793 = vmax.xlane.f32.xlu0 %v792_v47  ;;  %796 = vmax.xlane.f32.xlu1 %v795_v48 }
 0x2bd   :  { %v773_v49 = vpop.f32.mrb[10].mxu1 }
 0x2be   :  { %v2050_v50 = vpop.f32.mrb[11].mxu1  ;;  %v798_v51 = vsel %vm170_vm2, %v773_v49, -inf }
 0x2bf   :  { %799 = vmax.xlane.f32.xlu0 %v798_v51 }
 0x2cc   :  { %865 = vrot.lane.b32.xlu1 %v2396_v12, %s2282_s16 }
 0x2d0   :  { %1017 = vrot.lane.b32.xlu1 %v2414_v15, %s2282_s16 }
 0x2d4   :  { %1093 = vrot.lane.b32.xlu1 %v2419_v17, %s2282_s16 }
 0x2d5   :  { %941 = vrot.lane.b32.xlu0 %v2404_v13, %s2282_s16 }
 0x2d8   :  { %1245 = vrot.lane.b32.xlu1 %v2417_v16, %s2282_s16 }
 0x2d9   :  { %1169 = vrot.lane.b32.xlu0 %v2412_v14, %s2282_s16  ;;  %v779_v54 = vpop.xlane.xlu0 %778 }
 0x2da   :  { %v801_v55 = vsub.f32 %v241_v28, %v779_v54 }
 0x2dc   :  { %v809_v57 = vmul.f32 1.442695, %v801_v55 }
 0x2dd   :  { %v782_v52 = vpop.xlane.xlu1 %781 }
 0x2de   :  { %v802_v53 = vsub.f32 %v317_v31, %v782_v52 }
 0x2e0   :  { %v811_v56 = vmul.f32 1.442695, %v802_v53 }
 0x2e2   :  { %2185 = vpow2.f32 %v811_v56 }
 0x2e3   :  { %2187 = vpow2.f32 %v809_v57 }
 0x2ec   :  { %v2498_v58 = vpop.eup %2185 }
 0x2ed   :  { %v828_v59 = vsel %vm170_vm2, %v2498_v58, 0.0  ;;  %v2502_v60 = vpop.eup %2187 }
 0x2ee   :  { %v825_v61 = vsel %vm170_vm2, %v2502_v60, 0.0 }
 0x2f8   :  { %829 = vadd.xlane.f32.xlu0 %v828_v59 }
 0x2fc   :  { %826 = vadd.xlane.f32.xlu1 %v825_v61 }
 0x340   :  { %v785_v62 = vpop.xlane.xlu0 %784 }
 0x341   :  { %v803_v63 = vsub.f32 %v393_v34, %v785_v62 }
 0x343   :  { %v813_v0 = vmul.f32 1.442695, %v803_v63 }
 0x344   :  { %v791_v1 = vpop.xlane.xlu1 %790  ;;  %v788_v2 = vpop.xlane.xlu0 %787 }
 0x345   :  { %2189 = vpow2.f32 %v813_v0  ;;  %v805_v3 = vsub.f32 %v545_v38, %v791_v1  ;;  %v804_v4 = vsub.f32 %v469_v37, %v788_v2 }
 0x347   :  { %v817_v6 = vmul.f32 1.442695, %v805_v3  ;;  %v815_v8 = vmul.f32 1.442695, %v804_v4  ;;  %v1505_v3 = vld [vmem:[%s2655_s3] sm:$0xff]  ;;  %v1506_v4 = vld [vmem:[%s2655_s3 + $0x8] sm:$0xff] }
 0x348   :  { %v797_v9 = vpop.xlane.xlu1 %796  ;;  %v794_v11 = vpop.xlane.xlu0 %793 }
 0x349   :  { %2191 = vpow2.f32 %v817_v6  ;;  %v807_v12 = vsub.f32 %v697_v44, %v797_v9  ;;  %v806_v13 = vsub.f32 %v621_v43, %v794_v11  ;;  %v2140_v6 = vpack.c.bf16 %v1506_v4, %v1505_v3 }
 0x34a   :  { %2193 = vpow2.f32 %v815_v8  ;;  %v1508_v8 = vld [vmem:[%s2655_s3 + $0x18] sm:$0xff] }
 0x34b   :  { %v821_v14 = vmul.f32 1.442695, %v807_v12  ;;  %v819_v15 = vmul.f32 1.442695, %v806_v13 }
 0x34c   :  { %v866_v16 = vpop.permute.xlu1 %865  ;;  %v800_v17 = vpop.xlane.xlu0 %799 }
 0x34d   :  { %2195 = vpow2.f32 %v821_v14  ;;  %v808_v20 = vsub.f32 %v773_v49, %v800_v17  ;;  %2052 = vmatpush3.msra.mxu0 %v866_v16 }
 0x34e   :  { %2197 = vpow2.f32 %v819_v15  ;;  %2061 = vmatprep.subr.mxu0 %v2276_v10 }
 0x34f   :  { %v2190_v21 = vpop.eup %2189  ;;  %v823_v22 = vmul.f32 1.442695, %v808_v20 }
 0x350   :  { %v942_v23 = vpop.permute.xlu0 %941  ;;  %v831_v24 = vsel %vm170_vm2, %v2190_v21, 0.0  ;;  %v1018_v35 = vpop.permute.xlu1 %1017 }
 0x351   :  { %2199 = vpow2.f32 %v823_v22  ;;  %832 = vadd.xlane.f32.xlu1 %v831_v24  ;;  %2057 = vmatpush3.msra.mxu1 %v942_v23 }
 0x352   :  { %2066 = vmatprep.subr.mxu1 %v2276_v10 }
 0x353   :  { %v2192_v25 = vpop.eup %2191 }
 0x354   :  { %v2194_v26 = vpop.eup %2193  ;;  %v837_v27 = vsel %vm170_vm2, %v2192_v25, 0.0  ;;  %v1094_v36 = vpop.permute.xlu1 %1093 }
 0x355   :  { %838 = vadd.xlane.f32.xlu1 %v837_v27  ;;  %v834_v28 = vsel %vm170_vm2, %v2194_v26, 0.0  ;;  %v1170_v37 = vpop.permute.xlu0 %1169 }
 0x356   :  { %835 = vadd.xlane.f32.xlu0 %v834_v28 }
 0x357   :  { %v2196_v29 = vpop.eup %2195 }
 0x358   :  { %v2198_v30 = vpop.eup %2197  ;;  %v843_v31 = vsel %vm170_vm2, %v2196_v29, 0.0  ;;  %v1246_v38 = vpop.permute.xlu1 %1245 }
 0x359   :  { %844 = vadd.xlane.f32.xlu1 %v843_v31  ;;  %v840_v32 = vsel %vm170_vm2, %v2198_v30, 0.0 }
 0x35a   :  { %841 = vadd.xlane.f32.xlu0 %v840_v32 }
 0x35b   :  { %v2513_v33 = vpop.eup %2199 }
 0x35c   :  { %v846_v34 = vsel %vm170_vm2, %v2513_v33, 0.0 }
 0x35e   :  { %847 = vadd.xlane.f32.xlu0 %v846_v34 }
 0x36a   :  { %1397 = vrot.lane.b32.xlu1 %v2427_v19, %s2282_s16 }
 0x374   :  { %1321 = vrot.lane.b32.xlu0 %v2423_v18, %s2282_s16 }
 0x385   :  { %v830_v39 = vpop.xlane.xlu0 %829 }
 0x386   :  { %2201 = vrcp.f32 %v830_v39 }
 0x389   :  { %v827_v40 = vpop.xlane.xlu1 %826 }
 0x38a   :  { %2203 = vrcp.f32 %v827_v40 }
 0x390   :  { %v2202_v41 = vpop.eup %2201 }
 0x391   :  { %v858_v42 = vmul.f32 %v2202_v41, %v2498_v58 }
 0x393   :  { %2059 = vmatmul.mubr.msk.f32.vlgmr.msra.gmra.mrb[12].mxu1 %vm170_vm2, %v858_v42 }
 0x394   :  { %v2204_v43 = vpop.eup %2203  ;;  %2067 = vmatpush3.msra.mxu1 %v1094_v36  ;;  %2068 = vmatprep.mubr.msk.f32.mxu1 %vm2279_vm1, %v2276_v10 }
 0x395   :  { %v857_v18 = vmul.f32 %v2204_v43, %v2502_v60  ;;  %2076 = vmatprep.subr.mxu1 %v2276_v10 }
 0x397   :  { %2054 = vmatmul.mubr.msk.f32.vlgmr.msra.gmra.mrb[6].mxu0 %vm170_vm2, %v857_v18 }
 0x398   :  { %2062 = vmatpush3.msra.mxu0 %v1018_v35  ;;  %2063 = vmatprep.mubr.msk.f32.mxu0 %vm2279_vm1, %v2276_v10 }
 0x399   :  { %2071 = vmatprep.subr.mxu0 %v2276_v10 }
 0x3de   :  { %v833_v19 = vpop.xlane.xlu1 %832 }
 0x3df   :  { %2205 = vrcp.f32 %v833_v19 }
 0x3e2   :  { %v839_v44 = vpop.xlane.xlu1 %838 }
 0x3e3   :  { %2207 = vrcp.f32 %v839_v44  ;;  %v836_v45 = vpop.xlane.xlu0 %835 }
 0x3e4   :  { %2209 = vrcp.f32 %v836_v45 }
 0x3e6   :  { %v845_v46 = vpop.xlane.xlu1 %844 }
 0x3e7   :  { %2211 = vrcp.f32 %v845_v46  ;;  %v842_v47 = vpop.xlane.xlu0 %841 }
 0x3e8   :  { %2213 = vrcp.f32 %v842_v47 }
 0x3e9   :  { %v2206_v48 = vpop.eup %2205 }
 0x3ea   :  { %v859_v49 = vmul.f32 %v2206_v48, %v2190_v21  ;;  %v1398_v60 = vpop.permute.xlu1 %1397 }
 0x3eb   :  { %v848_v50 = vpop.xlane.xlu0 %847 }
 0x3ec   :  { %2215 = vrcp.f32 %v848_v50  ;;  %2064 = vmatmul.mubr.msk.f32.vlgmr.msra.gmra.mrb[8].mxu0 %vm170_vm2, %v859_v49 }
 0x3ed   :  { %v2208_v51 = vpop.eup %2207  ;;  %2072 = vmatpush3.msra.mxu0 %v1170_v37  ;;  %2073 = vmatprep.mubr.msk.f32.mxu0 %vm2279_vm1, %v2276_v10  ;;  %v1927_v37 = vld [vmem:[%s2656_s4] ss:$0 sm:$0xff] }
 0x3ee   :  { %v2210_v52 = vpop.eup %2209  ;;  %v861_v53 = vmul.f32 %v2208_v51, %v2192_v25  ;;  %2081 = vmatprep.subr.mxu0 %v2276_v10 }
 0x3ef   :  { %v860_v54 = vmul.f32 %v2210_v52, %v2194_v26  ;;  %v1322_v55 = vpop.permute.xlu0 %1321 }
 0x3f0   :  { %2074 = vmatmul.mubr.msk.f32.vlgmr.msra.gmra.mrb[10].mxu0 %vm170_vm2, %v861_v53  ;;  %v1645_v53 = vld [vmem:[%s2657_s5 + $0x8] sm:$0xff] }
 0x3f1   :  { %v2212_v56 = vpop.eup %2211  ;;  %2069 = vmatmul.mubr.msk.f32.vlgmr.msra.gmra.mrb[14].mxu1 %vm170_vm2, %v860_v54  ;;  %2082 = vmatpush3.msra.mxu0 %v1322_v55  ;;  %v1646_v55 = vld [vmem:[%s2657_s5 + $0x10] sm:$0xff] }
 0x3f2   :  { %v2214_v57 = vpop.eup %2213  ;;  %v863_v58 = vmul.f32 %v2212_v56, %v2196_v29  ;;  %2077 = vmatpush3.msra.mxu1 %v1246_v38  ;;  %2078 = vmatprep.mubr.msk.f32.mxu1 %vm2279_vm1, %v2276_v10  ;;  %v1647_v56 = vld [vmem:[%s2657_s5 + $0x18] sm:$0xff] }
 0x3f3   :  { %v862_v59 = vmul.f32 %v2214_v57, %v2198_v30  ;;  %2083 = vmatprep.mubr.msk.f32.mxu0 %vm2279_vm1, %v2276_v10  ;;  %2086 = vmatprep.subr.mxu1 %v2276_v10  ;;  %v2152_v57 = vpack.c.bf16 %v1647_v56, %v1646_v55  ;;  %v1938_v55 = vld [vmem:[%s2663_s11] ss:$0 sm:$0xff] }
 0x3f4   :  { %2084 = vmatmul.mubr.msk.f32.vlgmr.msra.gmra.mrb[12].mxu0 %vm170_vm2, %v863_v58  ;;  %2141 = vmatprep.subr.bf16.mxu0 %v2140_v6  ;;  %v1738_v58 = vld [vmem:[%s2659_s7] sm:$0xff] }
 0x3f5   :  { %2079 = vmatmul.mubr.msk.f32.vlgmr.msra.gmra.mrb[16].mxu1 %vm170_vm2, %v862_v59  ;;  %2143 = vmatpush3.bf16.msra.mxu0 %v2140_v6  ;;  %v1739_v59 = vld [vmem:[%s2659_s7 + $0x8] sm:$0xff] }
 0x3f6   :  { %v2216_v61 = vpop.eup %2215  ;;  %2087 = vmatpush3.msra.mxu1 %v1398_v60  ;;  %2088 = vmatprep.mubr.msk.f32.mxu1 %vm2279_vm1, %v2276_v10  ;;  %v1507_v10 = vld [vmem:[%s2655_s3 + $0x10] sm:$0xff] }
 0x3f7   :  { %v864_v62 = vmul.f32 %v2216_v61, %v2513_v33  ;;  %v2144_v9 = vpack.c.bf16 %v1508_v8, %v1507_v10  ;;  %v1740_v60 = vld [vmem:[%s2659_s7 + $0x10] sm:$0xff]  ;;  %v2156_v61 = vpack.c.bf16 %v1739_v59, %v1738_v58  ;;  %v1939_v59 = vld [vmem:[%s2664_s12] ss:$0 sm:$0xff] }
 0x3f9   :  { %2089 = vmatmul.mubr.msk.f32.vlgmr.msra.gmra.mrb[18].mxu1 %vm170_vm2, %v864_v62  ;;  %2145 = vmatprep.subr.bf16.mxu0 %v2144_v9  ;;  %v1741_v62 = vld [vmem:[%s2659_s7 + $0x18] sm:$0xff] }
 0x3fa   :  { %2147 = vmatpush3.bf16.msra.mxu0 %v2144_v9 }
 0x3fb   :  { %2157 = vmatprep.subr.bf16.mxu0 %v2156_v61 }
 0x466   :  { %v1013_v63 = vpop.f32.mrb[12].mxu1 }
 0x467   :  { %v2060_v0 = vpop.f32.mrb[13].mxu1 }
 0x468   :  { %v1742_v0 = vld [vmem:[%s2659_s7 + $0x20] sm:$0xff] }
 0x46a   :  { %v937_v1 = vpop.f32.mrb[6].mxu0 }
 0x46b   :  { %v2055_v2 = vpop.f32.mrb[7].mxu0 }
 0x4bf   :  { %v1089_v11 = vpop.f32.mrb[8].mxu0 }
 0x4c0   :  { %v2065_v12 = vpop.f32.mrb[9].mxu0  ;;  %1475 = vrot.lane.b32.xlu0 %v1089_v11, %s2275_s19 }
 0x4c1   :  { %v1930_v12 = vld [vmem:[%s2661_s9] ss:$0 sm:$0xff] }
 0x4c3   :  { %v1241_v13 = vpop.f32.mrb[10].mxu0 }
 0x4c4   :  { %v1165_v14 = vpop.f32.mrb[14].mxu1  ;;  %1483 = vrot.lane.b32.xlu0 %v1241_v13, %s2283_s28  ;;  %v2075_v15 = vpop.f32.mrb[11].mxu0 }
 0x4c5   :  { %1477 = vrot.lane.b32.xlu1 %v1165_v14, %s2275_s19  ;;  %v2070_v16 = vpop.f32.mrb[15].mxu1  ;;  %v1931_v14 = vld [vmem:[%s2662_s10] ss:$0 sm:$0xff] }
 0x4c7   :  { %v1393_v17 = vpop.f32.mrb[12].mxu0 }
 0x4c8   :  { %v1317_v20 = vpop.f32.mrb[16].mxu1  ;;  %1491 = vrot.lane.b32.xlu0 %v1393_v17, %s2284_s29  ;;  %v2085_v21 = vpop.f32.mrb[13].mxu0 }
 0x4c9   :  { %1485 = vrot.lane.b32.xlu1 %v1317_v20, %s2283_s28  ;;  %v2080_v22 = vpop.f32.mrb[17].mxu1 }
 0x4cc   :  { %v1469_v23 = vpop.f32.mrb[18].mxu1 }
 0x4cd   :  { %1493 = vrot.lane.b32.xlu1 %v1469_v23, %s2284_s29  ;;  %v2090_v24 = vpop.f32.mrb[19].mxu1  ;;  %v1744_v23 = vld [vmem:[%s2659_s7 + $0x30] sm:$0xff] }
 0x4ce   :  { %v1745_v24 = vld [vmem:[%s2659_s7 + $0x38] sm:$0xff] }
 0x532   :  { %v1476_v25 = vpop.permute.xlu0 %1475 }
 0x533   :  { %v1497_v28 = vsel %vm170_vm2, %v937_v1, %v1476_v25  ;;  %v1743_v1 = vld [vmem:[%s2659_s7 + $0x28] sm:$0xff]  ;;  %v2168_v25 = vpack.c.bf16 %v1745_v24, %v1744_v23 }
 0x534   :  { %v2164_v2 = vpack.c.bf16 %v1743_v1, %v1742_v0 }
 0x536   :  { %v1484_v26 = vpop.permute.xlu0 %1483 }
 0x537   :  { %v1478_v27 = vpop.permute.xlu1 %1477  ;;  %v1500_v29 = vsel %vm1499_vm3, %v1497_v28, %v1484_v26  ;;  %v1932_v26 = vld [vmem:[%s2658_s6] ss:$0 sm:$0xff] }
 0x538   :  { %v1498_v33 = vsel %vm170_vm2, %v1013_v63, %v1478_v27  ;;  %v2160_v63 = vpack.c.bf16 %v1741_v62, %v1740_v60 }
 0x53a   :  { %v1492_v30 = vpop.permute.xlu0 %1491 }
 0x53b   :  { %v1486_v31 = vpop.permute.xlu1 %1485  ;;  %v1503_v32 = vsel %vm1502_vm4, %v1500_v29, %v1492_v30 }
 0x53c   :  { %2099 = vmatprep.mubr.msk.f32.mxu0 %vm72_vm0, %v1503_v32  ;;  %v1501_v34 = vsel %vm1499_vm3, %v1498_v33, %v1486_v31  ;;  %v1935_v33 = vld [vmem:[%s2660_s8] ss:$0 sm:$0xff] }
 0x53f   :  { %v1494_v35 = vpop.permute.xlu1 %1493 }
 0x540   :  { %v1504_v36 = vsel %vm1502_vm4, %v1501_v34, %v1494_v35 }
 0x541   :  { %2100 = vmatmul.mubr.msk.f32.vlgmr.msra.gmra.mrb[14].mxu0 %vm72_vm0, %v1504_v36 }
 0x542   :  { %2159 = vmatpush3.bf16.msra.mxu0 %v2156_v61 }
 0x543   :  { %2161 = vmatprep.subr.bf16.mxu0 %v2160_v63 }
 0x546   :  { %2163 = vmatpush3.bf16.msra.mxu0 %v2160_v63 }
 0x547   :  { %2165 = vmatprep.subr.bf16.mxu0 %v2164_v2 }
 0x54a   :  { %2167 = vmatpush3.bf16.msra.mxu0 %v2164_v2 }
 0x54b   :  { %2169 = vmatprep.subr.bf16.mxu0 %v2168_v25 }
 0x54e   :  { %2171 = vmatpush3.bf16.msra.mxu0 %v2168_v25 }
 0x614   :  { %v2101_v38 = vpop.f32.mrb[14].mxu0 }
 0x615   :  { %v1594_v39 = vadd.f32 %v2101_v38, %v1927_v37  ;;  %v1588_v40 = vpop.f32.mrb[15].mxu0 }
 0x616   :  { %v1589_v41 = vadd.f32 %v1927_v37, %v1588_v40 }
 0x617   :  { %v1598_v42 = vadd.f32 %v1594_v39, %v2387_v7 }
 0x618   :  { %v1597_v43 = vadd.f32 %v1589_v41, %v2383_v5  ;;  %v1644_v5 = vld [vmem:[%s2657_s5] sm:$0xff] }
 0x619   :  { %v1604_v18 = vsel %vm72_vm0, %v1598_v42, 0.0  ;;  %v2148_v54 = vpack.c.bf16 %v1645_v53, %v1644_v5 }
 0x61a   :  { %1605 = vadd.xlane.f32.xlu1 %v1604_v18  ;;  %v1601_v19 = vsel %vm72_vm0, %v1597_v43, 0.0 }
 0x61b   :  { %1602 = vadd.xlane.f32.xlu0 %v1601_v19  ;;  %2149 = vmatprep.subr.bf16.mxu1 %v2148_v54 }
 0x61c   :  { %2151 = vmatpush3.bf16.msra.mxu1 %v2148_v54 }
 0x61d   :  { %2153 = vmatprep.subr.bf16.mxu1 %v2152_v57 }
 0x620   :  { %2155 = vmatpush3.bf16.msra.mxu1 %v2152_v57 }
 0x6a7   :  { %v1606_v44 = vpop.xlane.xlu1 %1605 }
 0x6a8   :  { %v1609_v45 = vmul.f32 0.03125, %v1606_v44  ;;  %v1603_v46 = vpop.xlane.xlu0 %1602 }
 0x6a9   :  { %v1608_v47 = vmul.f32 0.03125, %v1603_v46 }
 0x6aa   :  { %v1611_v48 = vsub.f32 %v1598_v42, %v1609_v45 }
 0x6ab   :  { %v1610_v49 = vsub.f32 %v1597_v43, %v1608_v47 }
 0x6ac   :  { %v1613_v52 = vmul.f32 %v1611_v48, %v1611_v48 }
 0x6ad   :  { %v1612_v50 = vmul.f32 %v1610_v49, %v1610_v49 }
 0x6ae   :  { %v1617_v7 = vsel %vm72_vm0, %v1613_v52, 0.0 }
 0x6af   :  { %v1614_v51 = vsel %vm72_vm0, %v1612_v50, 0.0 }
 0x6b0   :  { %1615 = vadd.xlane.f32.xlu0 %v1614_v51 }
 0x6b4   :  { %1618 = vadd.xlane.f32.xlu0 %v1617_v7 }
 0x73d   :  { %v1616_v3 = vpop.xlane.xlu0 %1615 }
 0x73e   :  { %v1620_v4 = vmul.f32 0.03125, %v1616_v3 }
 0x740   :  { %v1622_v6 = vadd.f32 1e-05, %v1620_v4 }
 0x741   :  { %v1619_v10 = vpop.xlane.xlu0 %1618 }
 0x742   :  { %2217 = vrsqrt.f32 %v1622_v6  ;;  %v1621_v8 = vmul.f32 0.03125, %v1619_v10 }
 0x744   :  { %v1623_v9 = vadd.f32 1e-05, %v1621_v8 }
 0x746   :  { %2219 = vrsqrt.f32 %v1623_v9 }
 0x74c   :  { %v2218_v11 = vpop.eup %2217 }
 0x74d   :  { %v1626_v13 = vmul.f32 %v2218_v11, %v1610_v49 }
 0x74f   :  { %v1634_v15 = vmul.f32 %v1930_v12, %v1626_v13 }
 0x750   :  { %v2220_v16 = vpop.eup %2219 }
 0x751   :  { %v1627_v17 = vmul.f32 %v2220_v16, %v1611_v48  ;;  %v1642_v20 = vadd.f32 %v1931_v14, %v1634_v15 }
 0x753   :  { %v1635_v21 = vmul.f32 %v1930_v12, %v1627_v17  ;;  %2110 = vmatprep.mubr.msk.f32.mxu1 %vm72_vm0, %v1642_v20 }
 0x755   :  { %v1643_v22 = vadd.f32 %v1931_v14, %v1635_v21 }
 0x757   :  { %2111 = vmatmul.mubr.msk.f32.vlgmr.msra.gmra.mrb[20].mxu1 %vm72_vm0, %v1643_v22 }
 0x82a   :  { %v2112_v27 = vpop.f32.mrb[20].mxu1 }
 0x82b   :  { %v1733_v28 = vadd.f32 %v2112_v27, %v1932_v26  ;;  %v1727_v29 = vpop.f32.mrb[21].mxu1 }
 0x82c   :  { %v1728_v30 = vadd.f32 %v1932_v26, %v1727_v29 }
 0x82d   :  { %v1737_v32 = vmax.f32 %v1733_v28, 0.0 }
 0x82e   :  { %v1736_v31 = vmax.f32 %v1728_v30, 0.0 }
 0x830   :  { %2129 = vmatprep.mubr.msk.f32.mxu0 %vm1753_vm5, %v1736_v31 }
 0x831   :  { %2130 = vmatmul.mubr.msk.f32.vlgmr.msra.gmra.mrb[16].mxu0 %vm1753_vm5, %v1737_v32 }
 0x904   :  { %v2131_v34 = vpop.f32.mrb[16].mxu0 }
 0x905   :  { %v1832_v35 = vadd.f32 %v2131_v34, %v1935_v33  ;;  %v1826_v36 = vpop.f32.mrb[17].mxu0 }
 0x906   :  { %v1827_v37 = vadd.f32 %v1935_v33, %v1826_v36 }
 0x907   :  { %v1836_v38 = vadd.f32 %v1832_v35, %v1643_v22 }
 0x908   :  { %v1835_v39 = vadd.f32 %v1827_v37, %v1642_v20 }
 0x909   :  { %v1842_v40 = vsel %vm72_vm0, %v1836_v38, 0.0 }
 0x90a   :  { %1843 = vadd.xlane.f32.xlu0 %v1842_v40  ;;  %v1839_v41 = vsel %vm72_vm0, %v1835_v39, 0.0 }
 0x90b   :  { %1840 = vadd.xlane.f32.xlu1 %v1839_v41 }
 0x997   :  { %v1844_v42 = vpop.xlane.xlu0 %1843 }
 0x998   :  { %v1846_v43 = vmul.f32 0.03125, %v1844_v42  ;;  %v1841_v18 = vpop.xlane.xlu1 %1840 }
 0x999   :  { %v1845_v19 = vmul.f32 0.03125, %v1841_v18 }
 0x99a   :  { %v1848_v44 = vsub.f32 %v1836_v38, %v1846_v43 }
 0x99b   :  { %v1847_v45 = vsub.f32 %v1835_v39, %v1845_v19 }
 0x99c   :  { %v1850_v46 = vmul.f32 %v1848_v44, %v1848_v44 }
 0x99d   :  { %v1849_v47 = vmul.f32 %v1847_v45, %v1847_v45 }
 0x99e   :  { %v1854_v48 = vsel %vm72_vm0, %v1850_v46, 0.0 }
 0x99f   :  { %1855 = vadd.xlane.f32.xlu0 %v1854_v48  ;;  %v1851_v49 = vsel %vm72_vm0, %v1849_v47, 0.0 }
 0x9a0   :  { %1852 = vadd.xlane.f32.xlu1 %v1851_v49 }
 0xa2c   :  { %v1856_v50 = vpop.xlane.xlu0 %1855 }
 0xa2d   :  { %v1858_v51 = vmul.f32 0.03125, %v1856_v50  ;;  %v1853_v52 = vpop.xlane.xlu1 %1852 }
 0xa2e   :  { %v1857_v7 = vmul.f32 0.03125, %v1853_v52 }
 0xa2f   :  { %v1860_v5 = vadd.f32 1e-05, %v1858_v51 }
 0xa30   :  { %v1859_v53 = vadd.f32 1e-05, %v1857_v7 }
 0xa31   :  { %2221 = vrsqrt.f32 %v1860_v5 }
 0xa32   :  { %2223 = vrsqrt.f32 %v1859_v53 }
 0xa3b   :  { %v2222_v54 = vpop.eup %2221 }
 0xa3c   :  { %v2224_v56 = vpop.eup %2223  ;;  %v1864_v57 = vmul.f32 %v2222_v54, %v1848_v44 }
 0xa3d   :  { %v1863_v58 = vmul.f32 %v2224_v56, %v1847_v45 }
 0xa3e   :  { %v1872_v60 = vmul.f32 %v1938_v55, %v1864_v57 }
 0xa3f   :  { %v1871_v61 = vmul.f32 %v1938_v55, %v1863_v58 }
 0xa40   :  { %v1880_v62 = vadd.f32 %v1939_v59, %v1872_v60 }
 0xa41   :  { %v1879_v63 = vadd.f32 %v1939_v59, %v1871_v61 }
 0xa42   :  { %1882 = vst.msk [vmem:[#allocation5 + $0x8] sm:$0xff] %vm72_vm0, %v1880_v62 }
 0xa43   :  { %1881 = vst.msk [vmem:[#allocation5] sm:$0xff] %vm72_vm0, %v1879_v63 }
 0xa44   :  { %2258 = shalt.err (!%p2255_p12)
}
 0xa45   :  { %s2259_s24 = scalar_lea.hbm %s2665_s13, 256 }
 0xa46   :  { %p2260_p13 = scmp.ne.s32.totalorder %s2665_s13, %s2259_s24  ;;  %p2263_p0 = scmp.lt.u32.totalorder %s2259_s24, %s2665_s13 }
 0xa48   :  { %p2265_p1 = pnand %p2263_p0, %p2260_p13 }
 0xa4a   :  { %2268 = shalt.err (!%p2265_p1)
}
 0xa4b   :  { %1894 = dma.vmem_to_hbm [thread:$0]  %s1889_s22, 256, %s2665_s13, [#allocation4], %s2274_s18, %s2274_s18, %s2275_s19  }
 0xa4c   :  { %2271 = dma.done.wait [#allocation4], 256  }
 0xa4d   :  { %2272 = vsyncadd [#allocation4], 4294967040 }
 0xa4e   :  { %1898 = vsyncpa [#allocation3], 1 }
 0xa4f   :  { %1899 = vsyncpa [#allocation4], 1 }

</bundles_post_ra>
